<compile_context>
chip_gen: v7x
topology: tpu7x:2x2x1
jax: 0.10.0
libtpu: 0.0.40
codegen_flags: <defaults>
</compile_context>

<pallas_src>
import jax
import jax.numpy as jnp
from jax.experimental import pallas as pl
from jax.experimental.pallas import tpu as pltpu

LC_PRIMITIVES = ("lc_skip", "lc_zero", "lc_fc")

_LANE = 128
_SUBLANE = 8
_VMEM_WORKSET_BUDGET = 24 * 2**20   # double-buffered tile budget (bytes)
_SMALL_PROBLEM_FLOPS = 1 << 24      # below this, a fused XLA dot is cheaper


def _round_up(x, m):
    return ((x + m - 1) // m) * m


# ----------------------------- Pallas kernel ------------------------------- #

def _fc_kernel(x_ref, w_ref, b_ref, o_ref):
    """One (tm, tn) output tile; the whole K reduction lives in the tile, so a
    single MXU matmul + fused bias add is all that is needed."""
    o_ref[...] = (
        jnp.dot(x_ref[...], w_ref[...], preferred_element_type=jnp.float32)
        + b_ref[...]
    ).astype(o_ref.dtype)


# ------------------------------ wrappers ----------------------------------- #

def _select_tiles(n, d_in_p, d_out, itemsize):
    """Pick (tm, tn) for a full-K tile; shrink only if VMEM would overflow."""
    tm = n if n <= 512 else 512            # full dim => no M edge masking
    tn = d_out if d_out <= 512 else 512    # full dim => no N edge masking

    def workset(tm_, tn_):
        # double-buffered x / w / out tiles + f32 bias tile
        return 2 * itemsize * (tm_ * d_in_p + d_in_p * tn_ + tm_ * tn_) \
            + 2 * 4 * tn_

    while workset(tm, tn) > _VMEM_WORKSET_BUDGET and (tm > _SUBLANE or tn > _LANE):
        if tm >= tn and tm > _SUBLANE:
            tm = max(_SUBLANE, _round_up(pl.cdiv(tm, 2), _SUBLANE))
        elif tn > _LANE:
            tn = max(_LANE, _round_up(pl.cdiv(tn, 2), _LANE))
        else:
            break

    # v7x has 2 TensorCores sharded over "parallel" grid axes: keep >= 2 M
    # blocks when the whole problem would otherwise land on a single block.
    if pl.cdiv(n, tm) == 1 and pl.cdiv(d_out, tn) == 1 and n >= 256:
        tm = _round_up(pl.cdiv(n, 2), _SUBLANE)

    return tm, tn, workset(tm, tn)


def lc_fc(fts, w, b, *, use_pallas=None):
    """y = fts @ w + b.

    w is [d_in, d_out] (PyTorch Linear weight transposed), b is [1, d_out]
    (a 1-D bias is accepted and reshaped).  f32 accumulation throughout.
    """
    n, d_in = fts.shape
    d_out = w.shape[1]
    if b.ndim == 1:
        b = b.reshape(1, -1)
    b = b.astype(jnp.float32)

    flops = 2 * n * d_in * d_out + n * d_out
    if use_pallas is None:
        use_pallas = flops >= _SMALL_PROBLEM_FLOPS
    if not use_pallas:
        # Launch-overhead dominated: let XLA's fused dot handle it.
        return (jnp.dot(fts, w, preferred_element_type=jnp.float32)
                + b).astype(fts.dtype)

    # K (the reduction) is kept whole inside each tile, so there is no K grid
    # axis, no accumulator and no init/epilogue.  K only needs explicit zero
    # padding when hidden_dim is not lane-aligned (M/N edges are masked by
    # Pallas on the output write and need no padding).
    d_in_p = _round_up(d_in, _LANE)
    if d_in_p != d_in:
        fts = jnp.pad(fts, ((0, 0), (0, d_in_p - d_in)))
        w = jnp.pad(w, ((0, d_in_p - d_in), (0, 0)))

    itemsize = jnp.dtype(fts.dtype).itemsize
    tm, tn, workset = _select_tiles(n, d_in_p, d_out, itemsize)
    gi, gj = pl.cdiv(n, tm), pl.cdiv(d_out, tn)

    cost = pl.CostEstimate(
        flops=flops,
        transcendentals=0,
        # x is re-read once per N block, w once per M block.
        bytes_accessed=(itemsize * (n * d_in_p * gj + d_in_p * d_out * gi
                                    + n * d_out) + 4 * d_out * gi),
    )

    return pl.pallas_call(
        _fc_kernel,
        out_shape=jax.ShapeDtypeStruct((n, d_out), fts.dtype),
        grid=(gi, gj),
        in_specs=[
            pl.BlockSpec((tm, d_in_p), lambda i, j: (i, 0)),
            pl.BlockSpec((d_in_p, tn), lambda i, j: (0, j)),
            pl.BlockSpec((1, tn), lambda i, j: (0, j)),
        ],
        out_specs=pl.BlockSpec((tm, tn), lambda i, j: (i, j)),
        compiler_params=pltpu.CompilerParams(
            dimension_semantics=("parallel", "parallel"),
            vmem_limit_bytes=min(48 * 2**20,
                                 max(32 * 2**20, int(workset * 1.5))),
        ),
        cost_estimate=cost,
    )(fts, w, b)


def lc_skip(fts):
    # Identity: no kernel — zero compute, zero extra HBM traffic.
    return fts


def lc_zero(fts):
    # Zero op: let XLA materialize/fuse the zeros; no kernel launch needed.
    return jnp.zeros_like(fts)


class LcOpBlock:
    """JAX/Pallas port of LcOpBlock: one op per LC primitive, dispatched on
    the primitive name at forward time (Python-static dispatch, as in the
    original ModuleList + .index())."""

    def __init__(self, hidden_dim, key):
        self.hidden_dim = hidden_dim
        # nn.Linear default init: uniform(-1/sqrt(fan_in), 1/sqrt(fan_in))
        kw, kb = jax.random.split(key)
        bound = 1.0 / (hidden_dim ** 0.5)
        # stored once as [in, out] == PyTorch W.T (and f32 bias) so no per-call
        # transpose / pad / cast work is needed.
        self.fc_w = jax.random.uniform(
            kw, (hidden_dim, hidden_dim), jnp.float32, -bound, bound)
        self.fc_b = jax.random.uniform(
            kb, (1, hidden_dim), jnp.float32, -bound, bound)

    def __call__(self, fts, primitive):
        idx = LC_PRIMITIVES.index(primitive)  # mirrors the PyTorch dispatch
        if idx == 0:    # lc_skip
            return lc_skip(fts)
        elif idx == 1:  # lc_zero
            return lc_zero(fts)
        else:           # lc_fc
            return lc_fc(fts, self.fc_w, self.fc_b)


# -------------------------------- main -------------------------------------- #

if __name__ == "__main__":
    key = jax.random.PRNGKey(0)
    k_params, k_x = jax.random.split(key)

    # Small, module-consistent shapes: hidden_dim=128, N=256 nodes.
    N, hidden_dim = 256, 128
    fts = jax.random.normal(k_x, (N, hidden_dim), dtype=jnp.float32)

    block = LcOpBlock(hidden_dim, k_params)

    y_skip = jax.block_until_ready(block(fts, "lc_skip"))
    y_zero = jax.block_until_ready(block(fts, "lc_zero"))
    y_fc = jax.block_until_ready(block(fts, "lc_fc"))  # auto dispatch path

    ref_fc = fts @ block.fc_w + block.fc_b
    assert jnp.allclose(y_skip, fts)
    assert jnp.allclose(y_zero, jnp.zeros_like(fts))
    assert jnp.allclose(y_fc, ref_fc, atol=1e-4, rtol=1e-4)

    # Force the Pallas path at the demo shape (auto dispatch uses plain XLA
    # here because the problem is launch-overhead dominated).
    y_fc_pallas = jax.block_until_ready(
        lc_fc(fts, block.fc_w, block.fc_b, use_pallas=True))
    assert jnp.allclose(y_fc_pallas, ref_fc, atol=1e-4, rtol=1e-4)

    # Non-aligned shapes exercise the K lane-padding guard (96 -> 128) and the
    # full-dim (non-128-multiple) output tile, with a 1-D bias.
    x_odd = jax.random.normal(jax.random.PRNGKey(1), (40, 96), jnp.float32)
    w_odd = jax.random.normal(jax.random.PRNGKey(2), (96, 160), jnp.float32) * 0.1
    b_odd = jax.random.normal(jax.random.PRNGKey(3), (160,), jnp.float32) * 0.1
    y_odd = jax.block_until_ready(lc_fc(x_odd, w_odd, b_odd, use_pallas=True))
    ref_odd = x_odd @ w_odd + b_odd
    assert jnp.allclose(y_odd, ref_odd, atol=1e-4, rtol=1e-4)

    print("KERNEL_OK")
</pallas_src>

<mosaic_0001>
module attributes {stable_mosaic.version = 11 : i64} {
  func.func @_fc_kernel(%arg0: i32, %arg1: i32, %arg2: memref<128x128xf32, #tpu.memory_space<vmem>>, %arg3: memref<128x128xf32, #tpu.memory_space<vmem>>, %arg4: memref<1x128xf32, #tpu.memory_space<vmem>>, %arg5: memref<128x128xf32, #tpu.memory_space<vmem>>) attributes {dimension_semantics = [#tpu.dimension_semantics<parallel>, #tpu.dimension_semantics<parallel>], iteration_bounds = array<i64: 2, 1>, scalar_prefetch = 0 : i64, scratch_operands = 0 : i64, tpu.core_type = #tpu.core_type<tc>, window_params = [{transform_indices = @transform_0, window_bounds = array<i64: 128, 128>}, {transform_indices = @transform_1, window_bounds = array<i64: 128, 128>}, {transform_indices = @transform_2, window_bounds = array<i64: 1, 128>}, {transform_indices = @transform_3, window_bounds = array<i64: 128, 128>}]} {
    %c0 = arith.constant 0 : index
    %c0_0 = arith.constant 0 : index
    %0 = vector.load %arg2[%c0, %c0_0] : memref<128x128xf32, #tpu.memory_space<vmem>>, vector<128x128xf32>
    %c0_1 = arith.constant 0 : index
    %c0_2 = arith.constant 0 : index
    %1 = vector.load %arg3[%c0_1, %c0_2] : memref<128x128xf32, #tpu.memory_space<vmem>>, vector<128x128xf32>
    %cst = arith.constant dense<0.000000e+00> : vector<128x128xf32>
    %2 = tpu.matmul %0, %1, %cst {dimension_numbers = #tpu.dot_dimension_numbers<[1], [0], [0], [1], [0, 0, 1, 1], [], []>} : vector<128x128xf32>, vector<128x128xf32>, vector<128x128xf32> -> vector<128x128xf32>
    %c0_3 = arith.constant 0 : index
    %c0_4 = arith.constant 0 : index
    %3 = vector.load %arg4[%c0_3, %c0_4] : memref<1x128xf32, #tpu.memory_space<vmem>>, vector<1x128xf32>
    %4 = vector.broadcast %3 : vector<1x128xf32> to vector<128x128xf32>
    %5 = arith.addf %2, %4 : vector<128x128xf32>
    %c0_5 = arith.constant 0 : index
    %c0_6 = arith.constant 0 : index
    %6 = vector.load %arg5[%c0_5, %c0_6] : memref<128x128xf32, #tpu.memory_space<vmem>>, vector<128x128xf32>
    tpu.vector_store %arg5[%c0_5, %c0_6], %5 {strides = array<i32>} : memref<128x128xf32, #tpu.memory_space<vmem>>, vector<128x128xf32>,
    return
  }
  func.func @transform_0(%arg0: i32, %arg1: i32) -> (i32, i32) {
    %c0_i32 = arith.constant 0 : i32
    %c0_i32_0 = arith.constant 0 : i32
    return %arg0, %c0_i32 : i32, i32
  }
  func.func @transform_1(%arg0: i32, %arg1: i32) -> (i32, i32) {
    %c0_i32 = arith.constant 0 : i32
    %c0_i32_0 = arith.constant 0 : i32
    return %c0_i32, %arg1 : i32, i32
  }
  func.func @transform_2(%arg0: i32, %arg1: i32) -> (i32, i32) {
    %c0_i32 = arith.constant 0 : i32
    %c0_i32_0 = arith.constant 0 : i32
    return %c0_i32, %arg1 : i32, i32
  }
  func.func @transform_3(%arg0: i32, %arg1: i32) -> (i32, i32) {
    %c0_i32 = arith.constant 0 : i32
    return %arg0, %arg1 : i32, i32
  }
}

</mosaic_0001>

<bundles_post_ra>
// kernel: tpu_custom_call.1
= control target key start
LH: loop header
LB: loop body
LE: loop exit
PB: predicated region body
PF: predicated region fallthrough
CT: control target
= control target key end

     0   :  { %8 = vsyncpa [#allocation3], 0  ;;  %s1239_s0 = inlined_call_operand.hbm [shape: f32[256,128], index: 0, kind: input, shape index: {}]   ;;  %s1240_s1 = inlined_call_operand.hbm [shape: f32[128,128], index: 1, kind: input, shape index: {}]   ;;  %s1241_s2 = inlined_call_operand.vmem [shape: f32[1,128], index: 2, kind: input, shape index: {}]   ;;  %s1242_s3 = inlined_call_operand.hbm [shape: f32[256,128], index: 3, kind: output, shape index: {}]  }
   0x1   :  { %10 = vsyncpa [#allocation3 + $0x1], 0 }
   0x2   :  { %11 = vsyncpa [#allocation6], 0 }
   0x3   :  { %12 = vsyncpa [#allocation4], 0 }
   0x4   :  { %14 = vsyncpa [#allocation4 + $0x1], 0  ;;  %s970_s12 = smov 0   ;;  %s972_s13 = smov 0  }
   0x5   :  { %s974_s14 = smov 0   ;;  %s976_s15 = smov 0  }
   0x6   :  { %s978_s16 = smov 0   ;;  %s980_s17 = smov 0  }
   0x7 LB: > { %s563_s18 = sadd.s32 4294967295, %s941_s17   ;;  %s564_s19 = sadd.s32 4294967294, %s941_s17   ;;  %s941_s17 = sphi %s980_s17, %s20_s17   ;;  %s937_s16 = sphi %s978_s16, %s1266_s16   ;;  %s933_s15 = sphi %s976_s15, %s1265_s15   ;;  %s929_s14 = sphi %s974_s14, %s1264_s14   ;;  %s925_s13 = sphi %s972_s13, %s1263_s13   ;;  %s921_s12 = sphi %s970_s12, %s1262_s12  }
   0x8   : > { %p52_p0 = scmp.ne.s32.totalorder %s925_s13, %s921_s12  ;;  %p1004_p1 = scmp.eq.s32.totalorder %s563_s18, 0 }
   0x9   : > { %p1008_p2 = scmp.eq.s32.totalorder %s563_s18, 1  ;;  %p136_p3 = scmp.eq.s32.totalorder %s564_s19, 1 }
   0xa   : > { %s1247_s20 = scalar_select %p1004_p1, 1, 0 }
   0xb   : > { %s1248_s21 = scalar_select %p1008_p2, 1, 0 }
   0xc   : > { %p1014_p4 = por %p1004_p1, %p52_p0  ;;  %p565_p5 = scmp.ge.s32.totalorder %s941_s17, 1 }
   0xd   : > { %p1019_p6 = por %p136_p3, %p52_p0  ;;  %p143_p7 = scmp.lt.s32.totalorder %s941_s17, 3 }
   0xe   : > { %s1249_s22 = scalar_select %p1014_p4, 1, 0 }
   0xf   : > { %s1250_s23 = scalar_select %p1019_p6, 1, 0 }
  0x10   : > { %p1024_p8 = pnand %p565_p5, %p143_p7  ;;  %s943_s25 = smov [#allocation5]  }
  0x11   : > { %s157_s26 = sshll.u32 %s943_s25, 4  ;;  %s32_s28 = sadd.s32 1, %s937_s16  ;;  %s158_s26 = int_to_ptr.vmem [resolvable:$true] %s157_s26 }
  0x12   : > { %s1251_s24 = scalar_select %p1024_p8, 1, 0 }
  0x13   : > { %p728_p9 = pneg %p1024_p8  ;;  %s797_s4 = scalar_lea.hbm %s1240_s1, 2048 }
  0x14   : > { %p798_p12 = scmp.ne.s32.totalorder %s1240_s1, %s797_s4  ;;  %p804_p5 = scmp.lt.u32.totalorder %s797_s4, %s1240_s1 }
  0x15   : > { %p1033_p11 = pnand %p728_p9, %p1004_p1 }
  0x17   : > { %p799_p13 = pneg %p1033_p11 }
  0x19   : > { %p800_p0 = pnand %p799_p13, %p798_p12 }
  0x1b   : > { %p801_p3 = pneg %p800_p0 }
  0x1d   : > { %p806_p7 = pnand %p804_p5, %p801_p3 }
  0x1f   : > { %809 = shalt.err (!%p806_p7)
}
  0x20   : > { %s810_s9 = scalar_lea.vmem %s158_s26, 2048  ;;  %p818_p1 = scmp.lt.s32.totalorder %s158_s26, %s158_s26 }
  0x21   : > { %p811_p9 = scmp.ne.s32.totalorder %s158_s26, %s810_s9  ;;  %p819_p4 = scmp.lt.s32.totalorder %s810_s9, %s810_s9 }
  0x23   : > { %p813_p10 = pnand %p811_p9, %p799_p13  ;;  %p820_p8 = por %p819_p4, %p818_p1 }
  0x25   : > { %p814_p6 = pneg %p813_p10 }
  0x27   : > { %p821_p2 = pnand %p820_p8, %p814_p6 }
  0x29   : > { %824 = shalt.err (!%p821_p2)
}
  0x2a   : > { %s944_s10 = smov 128   ;;  %s945_s11 = smov 8  }
  0x2b   : > { %731 = dma.hbm_to_vmem [thread:$0]  (!%p1033_p11), %s1240_s1, 2048, %s158_s26, [#allocation6], %s944_s10, %s944_s10, %s945_s11  }
  0x2c   : > { %p34_p1 = scmp.ge.s32.totalorder %s32_s28, 2  ;;  %s39_s25 = sadd.s32 1, %s929_s14 }
  0x2d   : > { %p46_p2 = scmp.ne.s32.totalorder %s929_s14, %s925_s13  ;;  %p47_p4 = scmp.eq.s32.totalorder %s941_s17, 0 }
  0x2e   : > { %s1268_s28 = smov (%p34_p1, %s32_s28), 0  ;;  %p1254_p8 = scmp.ne.s32.totalorder %s1248_s21, 0 }
  0x2f   : > { %p1063_p6 = por %p47_p4, %p46_p2  ;;  %s36_s30 = ssub.s32 %s937_s16, %s1268_s28 }
  0x30   : > { %p1069_p10 = por %p1254_p8, %p46_p2  ;;  %p741_p12 = scmp.lt.s32.totalorder %s941_s17, 2 }
  0x31   : > { %p37_p11 = scmp.eq.s32.totalorder %s36_s30, 0  ;;  %s177_s26 = sand.u32 1, %s929_s14  }
  0x32   : > { %s569_s4 = sshll.u32 %s177_s26, 7  ;;  %s582_s6 = sshll.u32 %s937_s16, 11 }
  0x33   : > { %s1078_s5 = scalar_select %p37_p11, %s929_s14, %s39_s25  }
  0x34   : > { %s1084_s9 = scalar_lea.hbm %s1239_s0, %s582_s6  ;;  %s181_s21 = scalar_lea.vmem [#allocation2], %s569_s4 }
  0x35   : > { %s188_s18 = sshll.u32 %s181_s21, 4  ;;  %p1090_p13 = pnand %p741_p12, %p1063_p6  ;;  %s1086_s18 = int_to_ptr.vmem [resolvable:$true] %s188_s18 }
  0x36   : > { %s1094_s25 = scalar_lea.sflag [#allocation3], %s177_s26  ;;  %s825_s30 = scalar_lea.hbm %s1084_s9, 2048 }
  0x37   : > { %p826_p0 = scmp.ne.s32.totalorder %s1084_s9, %s825_s30  ;;  %p827_p3 = pneg %p1090_p13 }
  0x38   : > { %s830_s29 = scalar_lea.hbm %s1239_s0, 4096  ;;  %p831_p9 = scmp.lt.u32.totalorder %s1084_s9, %s1239_s0 }
  0x39   : > { %p828_p5 = pnand %p827_p3, %p826_p0  ;;  %p832_p1 = scmp.lt.u32.totalorder %s830_s29, %s825_s30 }
  0x3a   : > { %p834_p4 = scmp.lt.u32.totalorder %s825_s30, %s1084_s9 }
  0x3b   : > { %p829_p7 = pneg %p828_p5  ;;  %p833_p2 = por %p832_p1, %p831_p9 }
  0x3d   : > { %p835_p6 = por %p834_p4, %p833_p2 }
  0x3f   : > { %p836_p8 = pnand %p835_p6, %p829_p7 }
  0x41   : > { %839 = shalt.err (!%p836_p8)
}
  0x42   : > { %s840_s26 = scalar_lea.vmem %s1086_s18, 2048  ;;  %s946_s21 = smov [#allocation2]  }
  0x43   : > { %p841_p12 = scmp.ne.s32.totalorder %s1086_s18, %s840_s26  ;;  %s845_s4 = sshll.u32 %s946_s21, 4  ;;  %s846_s4 = int_to_ptr.vmem [resolvable:$false] %s845_s4 }
  0x44   : > { %s847_s6 = scalar_lea.vmem %s846_s4, 4096  ;;  %p848_p5 = scmp.lt.s32.totalorder %s1086_s18, %s846_s4 }
  0x45   : > { %p843_p11 = pnand %p841_p12, %p827_p3  ;;  %p849_p9 = scmp.lt.s32.totalorder %s847_s6, %s840_s26 }
  0x47   : > { %p844_p0 = pneg %p843_p11  ;;  %p850_p1 = por %p849_p9, %p848_p5 }
  0x49   : > { %p851_p2 = pnand %p850_p1, %p844_p0 }
  0x4b   : > { %854 = shalt.err (!%p851_p2)
}
  0x4c   : > { %735 = dma.hbm_to_vmem [thread:$0]  (!%p1090_p13), %s1084_s9, 2048, %s1086_s18, %s1094_s25, %s944_s10, %s944_s10, %s945_s11  }
  0x4d   : > { %p1257_p3 = scmp.ne.s32.totalorder %s1251_s24, 0 }
  0x4e   : > { %s1128_s30 = sand.u32 (!%p1257_p3), 1, %s925_s13   ;;  %p1258_p7 = scmp.ne.s32.totalorder (!%p1257_p3), %s1249_s22, 0 }
  0x4f   : > { %200 = sbr.rel (%p1257_p3) target bundleno = 367 (0x16f), region = 32  ;;  %s573_s29 = sshll.u32 (!%p1257_p3), %s1128_s30, 7 }
  0x50   : > { %s203_s7 = scalar_lea.sflag (!%p1257_p3), [#allocation3], %s1128_s30  ;;  %s1134_s19 = scalar_lea.vmem (!%p1257_p3), [#allocation2], %s573_s29 }
  0x56   : > { %908 = dma.done.wait (%p1258_p7), %s203_s7, 2048  }
  0x57   : > { %910 = vsyncadd (%p1258_p7), %s203_s7, 4294965248  ;;  %p1259_p13 = scmp.ne.s32.totalorder %s1247_s20, 0 }
  0x59   : > { %912 = dma.done.wait (%p1259_p13), [#allocation6], 2048  }
  0x5a   : > { %914 = vsyncadd (%p1259_p13), [#allocation6], 4294965248  ;;  %v257_v0 = vld [vmem:[#allocation5] sm:$0xff]  ;;  %v258_v1 = vld [vmem:[#allocation5 + $0x8] sm:$0xff]  ;;  %s1165_s24 = scalar_lea.vmem [#allocation7], %s573_s29  ;;  %s583_s10 = sshll.u32 %s933_s15, 11 }
  0x5b   : > { %v259_v2 = vld [vmem:[#allocation5 + $0x10] sm:$0xff]  ;;  %v672_v3 = vpack.c.bf16 %v258_v1, %v257_v0  ;;  %v260_v4 = vld [vmem:[#allocation5 + $0x18] sm:$0xff]  ;;  %v261_v6 = vld [vmem:[#allocation5 + $0x20] sm:$0xff]  ;;  %s456_s11 = sshll.u32 %s1165_s24, 4  ;;  %s1184_s15 = scalar_lea.hbm %s1242_s3, %s583_s10  ;;  %s1186_s11 = int_to_ptr.vmem [resolvable:$true] %s456_s11 }
  0x5c   : > { %v676_v5 = vpack.c.bf16 %v260_v4, %v259_v2  ;;  %v262_v7 = vld [vmem:[#allocation5 + $0x28] sm:$0xff]  ;;  %v241_v9 = vld [vmem:[%s1134_s19] sm:$0xff]  ;;  %v263_v11 = vld [vmem:[#allocation5 + $0x30] sm:$0xff]  ;;  %s442_s25 = scalar_lea.sflag [#allocation4], %s1128_s30  ;;  %s855_s8 = scalar_lea.vmem %s1186_s11, 2048 }
  0x5d   : > { %673 = vmatprep.subr.bf16.mxu0 %v672_v3  ;;  %704 = vmatprep.subr.bf16.mxu1 %v672_v3  ;;  %v680_v8 = vpack.c.bf16 %v262_v7, %v261_v6  ;;  %v249_v10 = vld [vmem:[%s1134_s19 + $0x40] sm:$0xff]  ;;  %v264_v12 = vld [vmem:[#allocation5 + $0x38] sm:$0xff]  ;;  %v266_v15 = vld [vmem:[#allocation5 + $0x48] sm:$0xff]  ;;  %p856_p4 = scmp.ne.s32.totalorder %s1186_s11, %s855_s8  ;;  %s947_s26 = smov [#allocation7]  }
  0x5e   : > { %675 = vmatpush3.bf16.msra.mxu0 %v672_v3  ;;  %712 = vmatpush3.bf16.msra.mxu1 %v672_v3  ;;  %v684_v13 = vpack.c.bf16 %v264_v12, %v263_v11  ;;  %v265_v14 = vld [vmem:[#allocation5 + $0x40] sm:$0xff]  ;;  %v267_v17 = vld [vmem:[#allocation5 + $0x50] sm:$0xff]  ;;  %v268_v18 = vld [vmem:[#allocation5 + $0x58] sm:$0xff]  ;;  %s859_s21 = sshll.u32 %s947_s26, 4  ;;  %s860_s21 = int_to_ptr.vmem [resolvable:$false] %s859_s21 }
  0x5f   : > { %677 = vmatprep.subr.bf16.mxu0 %v676_v5  ;;  %705 = vmatprep.subr.bf16.mxu1 %v676_v5  ;;  %v688_v16 = vpack.c.bf16 %v266_v15, %v265_v14  ;;  %v692_v19 = vpack.c.bf16 %v268_v18, %v267_v17  ;;  %v269_v20 = vld [vmem:[#allocation5 + $0x60] sm:$0xff]  ;;  %v270_v21 = vld [vmem:[#allocation5 + $0x68] sm:$0xff]  ;;  %v271_v23 = vld [vmem:[#allocation5 + $0x70] sm:$0xff]  ;;  %p857_p6 = pnand %p856_p4, %p1069_p10  ;;  %s861_s4 = scalar_lea.vmem %s860_s21, 4096 }
  0x60   : > { %648 = vmatprep.mubr.f32.mxu0 %v241_v9  ;;  %660 = vmatprep.mubr.f32.mxu1 %v249_v10  ;;  %v696_v22 = vpack.c.bf16 %v270_v21, %v269_v20  ;;  %v272_v24 = vld [vmem:[#allocation5 + $0x78] sm:$0xff]  ;;  %v242_v26 = vld [vmem:[%s1134_s19 + $0x8] sm:$0xff]  ;;  %v243_v28 = vld [vmem:[%s1134_s19 + $0x10] sm:$0xff]  ;;  %p862_p12 = scmp.lt.s32.totalorder %s1186_s11, %s860_s21  ;;  %p863_p11 = scmp.lt.s32.totalorder %s861_s4, %s855_s8 }
  0x61   : > { %v700_v25 = vpack.c.bf16 %v272_v24, %v271_v23  ;;  %v250_v27 = vld [vmem:[%s1134_s19 + $0x48] sm:$0xff]  ;;  %v251_v29 = vld [vmem:[%s1134_s19 + $0x50] sm:$0xff]  ;;  %v244_v30 = vld [vmem:[%s1134_s19 + $0x18] sm:$0xff]  ;;  %p858_p8 = pneg %p857_p6 }
  0x62   : > { %679 = vmatpush3.bf16.msra.mxu0 %v676_v5  ;;  %713 = vmatpush3.bf16.msra.mxu1 %v676_v5  ;;  %v252_v31 = vld [vmem:[%s1134_s19 + $0x58] sm:$0xff]  ;;  %v245_v32 = vld [vmem:[%s1134_s19 + $0x20] sm:$0xff]  ;;  %v246_v34 = vld [vmem:[%s1134_s19 + $0x28] sm:$0xff]  ;;  %p864_p0 = por %p863_p11, %p862_p12 }
  0x63   : > { %681 = vmatprep.subr.bf16.mxu0 %v680_v8  ;;  %706 = vmatprep.subr.bf16.mxu1 %v680_v8  ;;  %v253_v33 = vld [vmem:[%s1134_s19 + $0x60] sm:$0xff]  ;;  %v254_v35 = vld [vmem:[%s1134_s19 + $0x68] sm:$0xff]  ;;  %v247_v36 = vld [vmem:[%s1134_s19 + $0x30] sm:$0xff] }
  0x64   : > { %v255_v37 = vld [vmem:[%s1134_s19 + $0x70] sm:$0xff]  ;;  %v248_v38 = vld [vmem:[%s1134_s19 + $0x38] sm:$0xff]  ;;  %v576_v40 = vld [vmem:[%s1241_s2] ss:$0 sm:$0xff]  ;;  %p865_p5 = pnand %p864_p0, %p858_p8 }
  0x65   : > { %v256_v39 = vld [vmem:[%s1134_s19 + $0x78] sm:$0xff] }
  0x66   : > { %683 = vmatpush3.bf16.msra.mxu0 %v680_v8  ;;  %714 = vmatpush3.bf16.msra.mxu1 %v680_v8 }
  0x67   : > { %685 = vmatprep.subr.bf16.mxu0 %v684_v13  ;;  %707 = vmatprep.subr.bf16.mxu1 %v684_v13 }
  0x6a   : > { %687 = vmatpush3.bf16.msra.mxu0 %v684_v13  ;;  %715 = vmatpush3.bf16.msra.mxu1 %v684_v13 }
  0x6b   : > { %689 = vmatprep.subr.bf16.mxu0 %v688_v16  ;;  %708 = vmatprep.subr.bf16.mxu1 %v688_v16 }
  0x6e   : > { %691 = vmatpush3.bf16.msra.mxu0 %v688_v16  ;;  %716 = vmatpush3.bf16.msra.mxu1 %v688_v16 }
  0x6f   : > { %693 = vmatprep.subr.bf16.mxu0 %v692_v19  ;;  %709 = vmatprep.subr.bf16.mxu1 %v692_v19 }
  0x72   : > { %695 = vmatpush3.bf16.msra.mxu0 %v692_v19  ;;  %717 = vmatpush3.bf16.msra.mxu1 %v692_v19 }
  0x73   : > { %697 = vmatprep.subr.bf16.mxu0 %v696_v22  ;;  %710 = vmatprep.subr.bf16.mxu1 %v696_v22 }
  0x76   : > { %699 = vmatpush3.bf16.msra.mxu0 %v696_v22  ;;  %718 = vmatpush3.bf16.msra.mxu1 %v696_v22 }
  0x77   : > { %701 = vmatprep.subr.bf16.mxu0 %v700_v25  ;;  %711 = vmatprep.subr.bf16.mxu1 %v700_v25 }
  0x7a   : > { %703 = vmatpush3.bf16.msra.mxu0 %v700_v25  ;;  %719 = vmatpush3.bf16.msra.mxu1 %v700_v25 }
  0x7d   : > { %649 = vmatmul.mubr.f32.vlgmr.msra.gmra.mrb[0].mxu0 %v242_v26  ;;  %661 = vmatmul.mubr.f32.vlgmr.msra.gmra.mrb[0].mxu1 %v250_v27 }
  0x7e   : > { %651 = vmatprep.mubr.f32.mxu0 %v243_v28  ;;  %663 = vmatprep.mubr.f32.mxu1 %v251_v29 }
  0x81   : > { %652 = vmatmul.mubr.f32.gmra.mrb[2].mxu0 %v244_v30  ;;  %664 = vmatmul.mubr.f32.gmra.mrb[2].mxu1 %v252_v31 }
  0x82   : > { %654 = vmatprep.mubr.f32.mxu0 %v245_v32  ;;  %666 = vmatprep.mubr.f32.mxu1 %v253_v33 }
  0x85   : > { %655 = vmatmul.mubr.f32.gmra.mrb[4].mxu0 %v246_v34  ;;  %667 = vmatmul.mubr.f32.gmra.mrb[4].mxu1 %v254_v35 }
  0x86   : > { %657 = vmatprep.mubr.f32.mxu0 %v247_v36  ;;  %669 = vmatprep.mubr.f32.mxu1 %v255_v37 }
  0x89   : > { %658 = vmatmul.mubr.f32.gmra.mrb[6].mxu0 %v248_v38  ;;  %670 = vmatmul.mubr.f32.gmra.mrb[6].mxu1 %v256_v39 }
 0x150   : > { %v650_v41 = vpop.f32.mrb[0].mxu0  ;;  %v662_v42 = vpop.f32.mrb[0].mxu1 }
 0x151   : > { %v352_v43 = vadd.f32 %v650_v41, %v576_v40  ;;  %v392_v44 = vadd.f32 %v662_v42, %v576_v40  ;;  %v346_v45 = vpop.f32.mrb[1].mxu0  ;;  %v386_v46 = vpop.f32.mrb[1].mxu1 }
 0x152   : > { %v347_v47 = vadd.f32 %v576_v40, %v346_v45  ;;  %v387_v48 = vadd.f32 %v576_v40, %v386_v46 }
 0x153   : > { %426 = vst [vmem:[%s1165_s24 + $0x8] sm:$0xff] %v352_v43  ;;  %434 = vst [vmem:[%s1165_s24 + $0x48] sm:$0xff] %v392_v44 }
 0x154   : > { %425 = vst [vmem:[%s1165_s24] sm:$0xff] %v347_v47  ;;  %433 = vst [vmem:[%s1165_s24 + $0x40] sm:$0xff] %v387_v48  ;;  %v653_v49 = vpop.f32.mrb[2].mxu0  ;;  %v665_v50 = vpop.f32.mrb[2].mxu1 }
 0x155   : > { %v362_v51 = vadd.f32 %v653_v49, %v576_v40  ;;  %v402_v52 = vadd.f32 %v665_v50, %v576_v40  ;;  %v356_v53 = vpop.f32.mrb[3].mxu0  ;;  %v396_v54 = vpop.f32.mrb[3].mxu1 }
 0x156   : > { %v357_v55 = vadd.f32 %v576_v40, %v356_v53  ;;  %v397_v56 = vadd.f32 %v576_v40, %v396_v54 }
 0x157   : > { %428 = vst [vmem:[%s1165_s24 + $0x18] sm:$0xff] %v362_v51  ;;  %436 = vst [vmem:[%s1165_s24 + $0x58] sm:$0xff] %v402_v52 }
 0x158   : > { %427 = vst [vmem:[%s1165_s24 + $0x10] sm:$0xff] %v357_v55  ;;  %435 = vst [vmem:[%s1165_s24 + $0x50] sm:$0xff] %v397_v56  ;;  %v656_v57 = vpop.f32.mrb[4].mxu0  ;;  %v668_v58 = vpop.f32.mrb[4].mxu1 }
 0x159   : > { %v372_v59 = vadd.f32 %v656_v57, %v576_v40  ;;  %v412_v60 = vadd.f32 %v668_v58, %v576_v40  ;;  %v366_v61 = vpop.f32.mrb[5].mxu0  ;;  %v406_v62 = vpop.f32.mrb[5].mxu1 }
 0x15a   : > { %v367_v63 = vadd.f32 %v576_v40, %v366_v61  ;;  %v407_v0 = vadd.f32 %v576_v40, %v406_v62 }
 0x15b   : > { %430 = vst [vmem:[%s1165_s24 + $0x28] sm:$0xff] %v372_v59  ;;  %438 = vst [vmem:[%s1165_s24 + $0x68] sm:$0xff] %v412_v60 }
 0x15c   : > { %429 = vst [vmem:[%s1165_s24 + $0x20] sm:$0xff] %v367_v63  ;;  %437 = vst [vmem:[%s1165_s24 + $0x60] sm:$0xff] %v407_v0  ;;  %v659_v1 = vpop.f32.mrb[6].mxu0  ;;  %v671_v2 = vpop.f32.mrb[6].mxu1 }
 0x15d   : > { %v382_v3 = vadd.f32 %v659_v1, %v576_v40  ;;  %v422_v4 = vadd.f32 %v671_v2, %v576_v40  ;;  %v376_v5 = vpop.f32.mrb[7].mxu0  ;;  %v416_v6 = vpop.f32.mrb[7].mxu1 }
 0x15e   : > { %v377_v7 = vadd.f32 %v576_v40, %v376_v5  ;;  %v417_v8 = vadd.f32 %v576_v40, %v416_v6 }
 0x15f   : > { %432 = vst [vmem:[%s1165_s24 + $0x38] sm:$0xff] %v382_v3  ;;  %440 = vst [vmem:[%s1165_s24 + $0x78] sm:$0xff] %v422_v4 }
 0x160   : > { %431 = vst [vmem:[%s1165_s24 + $0x30] sm:$0xff] %v377_v7  ;;  %439 = vst [vmem:[%s1165_s24 + $0x70] sm:$0xff] %v417_v8 }
 0x161   : > { %868 = shalt.err (!%p865_p5)
}
 0x162   : > { %s869_s6 = scalar_lea.hbm %s1184_s15, 2048  ;;  %s873_s19 = scalar_lea.hbm %s1242_s3, 4096 }
 0x163   : > { %p870_p9 = scmp.ne.s32.totalorder %s1184_s15, %s869_s6  ;;  %p874_p3 = scmp.lt.u32.totalorder %s1184_s15, %s1242_s3 }
 0x164   : > { %p875_p7 = scmp.lt.u32.totalorder %s873_s19, %s869_s6  ;;  %p877_p4 = scmp.lt.u32.totalorder %s869_s6, %s1184_s15 }
 0x165   : > { %p871_p1 = pnand %p870_p9, %p1069_p10 }
 0x166   : > { %p876_p13 = por %p875_p7, %p874_p3 }
 0x167   : > { %p872_p2 = pneg %p871_p1 }
 0x168   : > { %p878_p6 = por %p877_p4, %p876_p13 }
 0x16a   : > { %p879_p8 = pnand %p878_p6, %p872_p2 }
 0x16c   : > { %882 = shalt.err (!%p879_p8)
}
 0x16d   : > { %s948_s24 = smov 128   ;;  %s949_s10 = smov 8  }
 0x16e   : > { %726 = dma.vmem_to_hbm [thread:$0]  (%p1069_p10), %s1186_s11, 2048, %s1184_s15, %s442_s25, %s948_s24, %s948_s24, %s949_s10  }
 0x16f PF: > { %s471_s9 = sand.u32 1, %s921_s12   ;;  %p1260_p12 = scmp.ne.s32.totalorder %s1250_s23, 0 }
 0x170   : > { %p1261_p11 = scmp.ge.s32.totalorder %s941_s17, 2  ;;  %s472_s18 = scalar_lea.sflag [#allocation4], %s471_s9 }
 0x172   : > { %p737_p0 = pnand %p1261_p11, %p1260_p12 }
 0x174   : > { %916 = dma.done.wait (!%p737_p0), %s472_s18, 2048  }
 0x175   : > { %918 = vsyncadd (!%p737_p0), %s472_s18, 4294965248  ;;  %s20_s17 = sadd.s32 1, %s941_s17   ;;  %s1262_s12 = smov %s925_s13 }
 0x176   : > { %p17_p5 = scmp.ge.s32.totalorder %s20_s17, 4   ;;  %s1263_s13 = smov %s929_s14 }
 0x177   : > { %s1264_s14 = smov %s1078_s5  ;;  %s1265_s15 = smov %s937_s16 }
 0x178   : > { %s1266_s16 = smov %s1268_s28  ;;  %19 = sbr.rel (!%p17_p5) target bundleno = 7 (0x7), region = 85 }
 0x17f   :  { %477 = vsyncpa [#allocation3], 1 }
 0x180   :  { %479 = vsyncpa [#allocation3 + $0x1], 1 }
 0x181   :  { %480 = vsyncpa [#allocation6], 1 }
 0x182   :  { %481 = vsyncpa [#allocation4], 1 }
 0x183   :  { %483 = vsyncpa [#allocation4 + $0x1], 1 }

</bundles_post_ra>
